<compile_context>
chip_gen: v7x
topology: tpu7x:2x2x1
jax: 0.10.0
libtpu: 0.0.40
codegen_flags: <defaults>
</compile_context>

<pallas_src>
import jax
import jax.numpy as jnp
from jax import lax
from jax.experimental import pallas as pl
from jax.experimental.pallas import tpu as pltpu

PAD_TOP = 8  # sublane-aligned interior offset inside the h-padded scratch


def _make_kernel(NB, H, W, C):
    WC = W * C
    NBH = NB * H

    def kernel(x_ref, w1_ref, w2_ref, bn1_ref, bn2_ref, fc1_ref, fc2_ref,
               o_ref, pad_ref):
        # x_ref   : (NB, H, WC)        f32  lane-dense input block ((w, c) in lanes)
        # w1_ref  : (3, WC, WC)        bf16 banded conv1 weight, one (WC, WC) per h-tap
        # w2_ref  : (3, WC, WC)        bf16 banded conv2 weight
        # bn1_ref : (2, WC)            f32  row0 = folded scale, row1 = folded bias
        # bn2_ref : (2, WC)            f32
        # fc1_ref : (WC, Cr)           bf16 SE fc1, tiled over w (folds the w-sum of GAP)
        # fc2_ref : (Cr, WC)           bf16 SE fc2, spread over w
        # o_ref   : (NB, H, WC)        f32
        # pad_ref : (NB, H+16, WC)     bf16 h-padded activation scratch, interior at [8:8+H)

        # Zero only the two h-halo rows (w padding is folded into the banded weights).
        zrow = jnp.zeros((NB, 1, WC), jnp.bfloat16)
        pad_ref[:, PAD_TOP - 1:PAD_TOP, :] = zrow
        pad_ref[:, PAD_TOP + H:PAD_TOP + H + 1, :] = zrow

        # Input -> sublane-aligned interior (bf16 storage; residual is NOT kept live,
        # x_ref is simply re-read at the final add).
        pad_ref[:, PAD_TOP:PAD_TOP + H, :] = x_ref[...].astype(jnp.bfloat16)

        def conv3x3(w_ref):
            # Three accumulating MXU dots (one per h-tap), f32 accumulation.
            # No concat / no per-dot casts: operands come straight from the bf16 scratch.
            p = pad_ref[:, PAD_TOP - 1:PAD_TOP - 1 + H, :].reshape(NBH, WC)
            acc = jnp.dot(p, w_ref[0], preferred_element_type=jnp.float32)
            for ky in (1, 2):
                p = pad_ref[:, PAD_TOP - 1 + ky:PAD_TOP - 1 + ky + H, :].reshape(NBH, WC)
                acc = acc + jnp.dot(p, w_ref[ky], preferred_element_type=jnp.float32)
            return acc                                               # (NBH, WC) f32

        # conv1 -> bn1 -> relu; write result back into the interior as conv2's input.
        out1 = jnp.maximum(conv3x3(w1_ref) * bn1_ref[0:1, :] + bn1_ref[1:2, :], 0.0)
        pad_ref[:, PAD_TOP:PAD_TOP + H, :] = out1.reshape(NB, H, WC).astype(jnp.bfloat16)

        # conv2 -> bn2 (f32 values).
        out2 = conv3x3(w2_ref) * bn2_ref[0:1, :] + bn2_ref[1:2, :]   # (NBH, WC)
        out2_3d = out2.reshape(NB, H, WC)

        # SE: global avg pool -> fc1 -> relu -> fc2 -> sigmoid.  The sum over w is
        # folded into the w-tiled fc1 weight, so the whole path stays lane-dense;
        # the gate comes back already spread over (w, c) lanes.
        hmean = out2_3d.sum(axis=1) * (1.0 / (H * W))                # (NB, WC)
        hidden = jnp.maximum(
            jnp.dot(hmean.astype(jnp.bfloat16), fc1_ref[...],
                    preferred_element_type=jnp.float32), 0.0)        # (NB, Cr)
        gate = jax.nn.sigmoid(
            jnp.dot(hidden.astype(jnp.bfloat16), fc2_ref[...],
                    preferred_element_type=jnp.float32))             # (NB, WC)

        # scale, add residual (re-read the VMEM-resident input block), final ReLU.
        out = out2_3d * gate[:, None, :] + x_ref[...]
        o_ref[...] = jnp.maximum(out, 0.0).astype(o_ref.dtype)

    return kernel


def _band_conv_weight(w_oihw, W):
    """OIHW (Cout, Cin, 3, 3) -> banded (3, W*Cin, W*Cout), ky-major, kx/w folded.

    B[ky, w'*Cin+ci, w*Cout+co] = weight[co, ci, ky, kx] when w' = w + kx - 1
    (zero otherwise), which implements the stride-1, padding-1 conv over w.
    """
    wk = jnp.transpose(w_oihw, (2, 3, 1, 0))          # (ky, kx, Cin, Cout)
    blocks = []
    for ky in range(3):
        b = 0.0
        for kx in range(3):
            b = b + jnp.kron(jnp.eye(W, k=1 - kx, dtype=w_oihw.dtype), wk[ky, kx])
        blocks.append(b)
    return jnp.stack(blocks, axis=0)                  # (3, W*Cin, W*Cout)


def _pick_batch_block(N, H, WC, vmem_budget_bytes=24 << 20):
    """Largest divisor of N whose per-step VMEM footprint fits the budget.

    Bigger NB => bigger M = NB*H per MXU dot (the single largest compute lever);
    single-TC chips get nothing from extra grid steps, so default to grid=(1,).
    """
    def step_bytes(nb):
        io = 2 * 2 * nb * H * WC * 4            # x + out blocks, double-buffered f32
        scratch = nb * (H + 16) * WC * 2        # bf16 padded scratch
        return io + scratch
    for nb in range(N, 0, -1):
        if N % nb == 0 and step_bytes(nb) <= vmem_budget_bytes:
            return nb
    return 1


def se_basic_block_nhwc(x_nhwc, params, eps=1e-5, batch_block=None):
    """Forward pass of SEBasicBlock in NHWC (stride=1, no downsample, inference BN)."""
    x = x_nhwc.astype(jnp.float32)
    N, H, W, Cin = x.shape
    w1 = params["conv1_w"]            # (C, Cin, 3, 3) OIHW
    w2 = params["conv2_w"]            # (C, C, 3, 3)
    C = w1.shape[0]
    assert Cin == C, "kernel assumes inplanes == planes (stride=1, no downsample)"
    WC = W * C
    Cr = params["fc1_w"].shape[0]

    NB = _pick_batch_block(N, H, WC) if batch_block is None else batch_block
    assert N % NB == 0, "batch_block must divide N"

    # Banded conv weights (kx/w taps folded), bf16 operands with f32 accumulation.
    w1b = _band_conv_weight(w1, W).astype(jnp.bfloat16)          # (3, WC, WC)
    w2b = _band_conv_weight(w2, W).astype(jnp.bfloat16)

    # Fold BatchNorm (inference) into per-channel scale/bias, tiled over w.
    s1 = params["bn1_gamma"] / jnp.sqrt(params["bn1_var"] + eps)
    b1 = params["bn1_beta"] - params["bn1_mean"] * s1
    s2 = params["bn2_gamma"] / jnp.sqrt(params["bn2_var"] + eps)
    b2 = params["bn2_beta"] - params["bn2_mean"] * s2
    bn1 = jnp.stack([jnp.tile(s1, W), jnp.tile(b1, W)], axis=0)  # (2, WC) f32
    bn2 = jnp.stack([jnp.tile(s2, W), jnp.tile(b2, W)], axis=0)

    # SE fc weights, pre-tiled/spread over w so the SE path is lane-dense.
    fc1t = jnp.tile(params["fc1_w"].T, (W, 1)).astype(jnp.bfloat16)   # (WC, Cr)
    fc2s = jnp.tile(params["fc2_w"].T, (1, W)).astype(jnp.bfloat16)   # (Cr, WC)

    x_in = x.reshape(N, H, WC)        # lane-dense activations

    # Cost estimate: banded K = 3*WC per conv, sigmoid runs per (w, c) lane.
    flops = 2 * (2 * N * H * WC * (3 * WC))           # two banded convs
    flops += 2 * N * (WC * Cr + Cr * WC)              # SE fc1/fc2
    flops += 12 * N * H * WC                          # BN / ReLU / gate / residual
    transcendentals = N * WC                          # sigmoid per (w, c) lane
    bytes_accessed = (2 * N * H * WC) * 4 \
        + (w1b.size + w2b.size + fc1t.size + fc2s.size) * 2 \
        + (bn1.size + bn2.size) * 4
    cost = pl.CostEstimate(flops=flops, transcendentals=transcendentals,
                           bytes_accessed=bytes_accessed)

    kernel = _make_kernel(NB, H, W, C)
    out = pl.pallas_call(
        kernel,
        out_shape=jax.ShapeDtypeStruct((N, H, WC), jnp.float32),
        grid_spec=pltpu.PrefetchScalarGridSpec(
            num_scalar_prefetch=0,
            grid=(N // NB,),
            in_specs=[
                pl.BlockSpec((NB, H, WC), lambda n: (n, 0, 0)),       # x
                pl.BlockSpec((3, WC, WC), lambda n: (0, 0, 0)),       # conv1 (banded)
                pl.BlockSpec((3, WC, WC), lambda n: (0, 0, 0)),       # conv2 (banded)
                pl.BlockSpec((2, WC), lambda n: (0, 0)),              # bn1 scale/bias
                pl.BlockSpec((2, WC), lambda n: (0, 0)),              # bn2 scale/bias
                pl.BlockSpec((WC, Cr), lambda n: (0, 0)),             # SE fc1 (tiled)
                pl.BlockSpec((Cr, WC), lambda n: (0, 0)),             # SE fc2 (spread)
            ],
            out_specs=pl.BlockSpec((NB, H, WC), lambda n: (n, 0, 0)),
            scratch_shapes=[pltpu.VMEM((NB, H + 16, WC), jnp.bfloat16)],
        ),
        compiler_params=pltpu.CompilerParams(dimension_semantics=("parallel",)),
        cost_estimate=cost,
    )(x_in, w1b, w2b, bn1, bn2, fc1t, fc2s)

    return out.reshape(N, H, W, C)


def se_basic_block(x_nchw, params, eps=1e-5, batch_block=None):
    """PyTorch-layout (NCHW) wrapper.  Prefer se_basic_block_nhwc at the model level
    so the two HBM-round-trip transposes below disappear."""
    x = jnp.transpose(x_nchw, (0, 2, 3, 1))            # NCHW -> NHWC
    out = se_basic_block_nhwc(x, params, eps=eps, batch_block=batch_block)
    return jnp.transpose(out, (0, 3, 1, 2))            # NHWC -> NCHW


def _reference(x_nchw, params, eps=1e-5):
    """Pure-JAX (f32) reference of the PyTorch forward (inference-mode BN)."""
    dn = ("NCHW", "OIHW", "NCHW")
    s1 = params["bn1_gamma"] / jnp.sqrt(params["bn1_var"] + eps)
    b1 = params["bn1_beta"] - params["bn1_mean"] * s1
    s2 = params["bn2_gamma"] / jnp.sqrt(params["bn2_var"] + eps)
    b2 = params["bn2_beta"] - params["bn2_mean"] * s2

    out = lax.conv_general_dilated(x_nchw, params["conv1_w"], (1, 1), "SAME",
                                   dimension_numbers=dn)
    out = out * s1[None, :, None, None] + b1[None, :, None, None]
    out = jnp.maximum(out, 0.0)
    out = lax.conv_general_dilated(out, params["conv2_w"], (1, 1), "SAME",
                                   dimension_numbers=dn)
    out = out * s2[None, :, None, None] + b2[None, :, None, None]
    # SE layer
    y = out.mean(axis=(2, 3))                         # (N, C)
    h = jnp.maximum(y @ params["fc1_w"].T, 0.0)       # (N, Cr)
    g = jax.nn.sigmoid(h @ params["fc2_w"].T)         # (N, C)
    out = out * g[:, :, None, None]
    out = jnp.maximum(out + x_nchw, 0.0)
    return out


if __name__ == "__main__":
    # Small shapes: batch=4, inplanes=planes=16, spatial=8x8, reduction=4 -> Cr=4.
    # W*C = 128, so the in-kernel layout is exactly one full lane row per (n, h),
    # and NB defaults to N (grid=(1,)) giving M = N*H = 32 rows per conv dot.
    N, C, H, W = 4, 16, 8, 8
    Cr = C // 4

    key = jax.random.PRNGKey(0)
    ks = jax.random.split(key, 13)
    params = {
        "conv1_w":  0.1 * jax.random.normal(ks[0], (C, C, 3, 3), jnp.float32),
        "conv2_w":  0.1 * jax.random.normal(ks[1], (C, C, 3, 3), jnp.float32),
        "bn1_gamma": 1.0 + 0.1 * jax.random.normal(ks[2], (C,), jnp.float32),
        "bn1_beta":  0.1 * jax.random.normal(ks[3], (C,), jnp.float32),
        "bn1_mean":  0.1 * jax.random.normal(ks[4], (C,), jnp.float32),
        "bn1_var":   jax.random.uniform(ks[5], (C,), jnp.float32, 0.5, 1.5),
        "bn2_gamma": 1.0 + 0.1 * jax.random.normal(ks[6], (C,), jnp.float32),
        "bn2_beta":  0.1 * jax.random.normal(ks[7], (C,), jnp.float32),
        "bn2_mean":  0.1 * jax.random.normal(ks[8], (C,), jnp.float32),
        "bn2_var":   jax.random.uniform(ks[9], (C,), jnp.float32, 0.5, 1.5),
        "fc1_w":    0.2 * jax.random.normal(ks[10], (Cr, C), jnp.float32),  # Linear(C, Cr)
        "fc2_w":    0.2 * jax.random.normal(ks[11], (C, Cr), jnp.float32),  # Linear(Cr, C)
    }
    x = jax.random.normal(ks[12], (N, C, H, W), jnp.float32)

    out = jax.block_until_ready(se_basic_block(x, params))
    ref = jax.block_until_ready(_reference(x, params))

    assert out.shape == ref.shape == (N, C, H, W)
    max_err = float(jnp.max(jnp.abs(out - ref)))
    # bf16 matmul operands / bf16 activation storage (f32 accumulation) -> few e-2 abs error.
    assert jnp.allclose(out, ref, atol=5e-2, rtol=5e-2), max_err

    print("KERNEL_OK")
</pallas_src>

<mosaic_0001>
module attributes {stable_mosaic.version = 11 : i64} {
  func.func @kernel(%arg0: i32, %arg1: memref<4x8x128xf32, #tpu.memory_space<vmem>>, %arg2: memref<3x128x128xbf16, #tpu.memory_space<vmem>>, %arg3: memref<3x128x128xbf16, #tpu.memory_space<vmem>>, %arg4: memref<2x128xf32, #tpu.memory_space<vmem>>, %arg5: memref<2x128xf32, #tpu.memory_space<vmem>>, %arg6: memref<128x4xbf16, #tpu.memory_space<vmem>>, %arg7: memref<4x128xbf16, #tpu.memory_space<vmem>>, %arg8: memref<4x8x128xf32, #tpu.memory_space<vmem>>, %arg9: memref<4x24x128xbf16, #tpu.memory_space<vmem>>) attributes {dimension_semantics = [#tpu.dimension_semantics<parallel>], iteration_bounds = array<i64: 1>, scalar_prefetch = 0 : i64, scratch_operands = 1 : i64, tpu.core_type = #tpu.core_type<tc>, window_params = [{transform_indices = @transform_0, window_bounds = array<i64: 4, 8, 128>}, {pipeline_mode = #tpu.pipeline_mode<synchronous>, transform_indices = @transform_1, window_bounds = array<i64: 3, 128, 128>}, {pipeline_mode = #tpu.pipeline_mode<synchronous>, transform_indices = @transform_2, window_bounds = array<i64: 3, 128, 128>}, {pipeline_mode = #tpu.pipeline_mode<synchronous>, transform_indices = @transform_3, window_bounds = array<i64: 2, 128>}, {pipeline_mode = #tpu.pipeline_mode<synchronous>, transform_indices = @transform_4, window_bounds = array<i64: 2, 128>}, {pipeline_mode = #tpu.pipeline_mode<synchronous>, transform_indices = @transform_5, window_bounds = array<i64: 128, 4>}, {pipeline_mode = #tpu.pipeline_mode<synchronous>, transform_indices = @transform_6, window_bounds = array<i64: 4, 128>}, {transform_indices = @transform_7, window_bounds = array<i64: 4, 8, 128>}]} {
    %cst = arith.constant 0.000000e+00 : bf16
    %0 = vector.broadcast %cst : bf16 to vector<4x1x128xbf16>
    %c0 = arith.constant 0 : index
    %c7 = arith.constant 7 : index
    %c0_0 = arith.constant 0 : index
    %1 = vector.load %arg9[%c0, %c7, %c0_0] : memref<4x24x128xbf16, #tpu.memory_space<vmem>>, vector<4x1x128xbf16>
    tpu.vector_store %arg9[%c0, %c7, %c0_0], %0 {strides = array<i32>} : memref<4x24x128xbf16, #tpu.memory_space<vmem>>, vector<4x1x128xbf16>,
    %c0_1 = arith.constant 0 : index
    %c16 = arith.constant 16 : index
    %c0_2 = arith.constant 0 : index
    %2 = vector.load %arg9[%c0_1, %c16, %c0_2] : memref<4x24x128xbf16, #tpu.memory_space<vmem>>, vector<4x1x128xbf16>
    tpu.vector_store %arg9[%c0_1, %c16, %c0_2], %0 {strides = array<i32>} : memref<4x24x128xbf16, #tpu.memory_space<vmem>>, vector<4x1x128xbf16>,
    %c0_3 = arith.constant 0 : index
    %c0_4 = arith.constant 0 : index
    %c0_5 = arith.constant 0 : index
    %3 = vector.load %arg1[%c0_3, %c0_4, %c0_5] : memref<4x8x128xf32, #tpu.memory_space<vmem>>, vector<4x8x128xf32>
    %4 = arith.truncf %3 : vector<4x8x128xf32> to vector<4x8x128xbf16>
    %c0_6 = arith.constant 0 : index
    %c8 = arith.constant 8 : index
    %c0_7 = arith.constant 0 : index
    %5 = vector.load %arg9[%c0_6, %c8, %c0_7] : memref<4x24x128xbf16, #tpu.memory_space<vmem>>, vector<4x8x128xbf16>
    tpu.vector_store %arg9[%c0_6, %c8, %c0_7], %4 {strides = array<i32>} : memref<4x24x128xbf16, #tpu.memory_space<vmem>>, vector<4x8x128xbf16>,
    %c0_8 = arith.constant 0 : index
    %c7_9 = arith.constant 7 : index
    %c0_10 = arith.constant 0 : index
    %6 = vector.load %arg9[%c0_8, %c7_9, %c0_10] : memref<4x24x128xbf16, #tpu.memory_space<vmem>>, vector<4x8x128xbf16>
    %7 = vector.shape_cast %6 : vector<4x8x128xbf16> to vector<32x128xbf16>
    %c0_11 = arith.constant 0 : index
    %c0_12 = arith.constant 0 : index
    %c0_13 = arith.constant 0 : index
    %8 = vector.load %arg2[%c0_11, %c0_12, %c0_13] : memref<3x128x128xbf16, #tpu.memory_space<vmem>>, vector<1x128x128xbf16>
    %9 = vector.shape_cast %8 : vector<1x128x128xbf16> to vector<128x128xbf16>
    %cst_14 = arith.constant dense<0.000000e+00> : vector<32x128xf32>
    %10 = tpu.matmul %7, %9, %cst_14 {dimension_numbers = #tpu.dot_dimension_numbers<[1], [0], [0], [1], [0, 0, 1, 1], [], []>} : vector<32x128xbf16>, vector<128x128xbf16>, vector<32x128xf32> -> vector<32x128xf32>
    %c0_15 = arith.constant 0 : index
    %c8_16 = arith.constant 8 : index
    %c0_17 = arith.constant 0 : index
    %11 = vector.load %arg9[%c0_15, %c8_16, %c0_17] : memref<4x24x128xbf16, #tpu.memory_space<vmem>>, vector<4x8x128xbf16>
    %12 = vector.shape_cast %11 : vector<4x8x128xbf16> to vector<32x128xbf16>
    %c1 = arith.constant 1 : index
    %c0_18 = arith.constant 0 : index
    %c0_19 = arith.constant 0 : index
    %13 = vector.load %arg2[%c1, %c0_18, %c0_19] : memref<3x128x128xbf16, #tpu.memory_space<vmem>>, vector<1x128x128xbf16>
    %14 = vector.shape_cast %13 : vector<1x128x128xbf16> to vector<128x128xbf16>
    %cst_20 = arith.constant dense<0.000000e+00> : vector<32x128xf32>
    %15 = tpu.matmul %12, %14, %cst_20 {dimension_numbers = #tpu.dot_dimension_numbers<[1], [0], [0], [1], [0, 0, 1, 1], [], []>} : vector<32x128xbf16>, vector<128x128xbf16>, vector<32x128xf32> -> vector<32x128xf32>
    %16 = arith.addf %10, %15 : vector<32x128xf32>
    %c0_21 = arith.constant 0 : index
    %c9 = arith.constant 9 : index
    %c0_22 = arith.constant 0 : index
    %17 = vector.load %arg9[%c0_21, %c9, %c0_22] : memref<4x24x128xbf16, #tpu.memory_space<vmem>>, vector<4x8x128xbf16>
    %18 = vector.shape_cast %17 : vector<4x8x128xbf16> to vector<32x128xbf16>
    %c2 = arith.constant 2 : index
    %c0_23 = arith.constant 0 : index
    %c0_24 = arith.constant 0 : index
    %19 = vector.load %arg2[%c2, %c0_23, %c0_24] : memref<3x128x128xbf16, #tpu.memory_space<vmem>>, vector<1x128x128xbf16>
    %20 = vector.shape_cast %19 : vector<1x128x128xbf16> to vector<128x128xbf16>
    %cst_25 = arith.constant dense<0.000000e+00> : vector<32x128xf32>
    %21 = tpu.matmul %18, %20, %cst_25 {dimension_numbers = #tpu.dot_dimension_numbers<[1], [0], [0], [1], [0, 0, 1, 1], [], []>} : vector<32x128xbf16>, vector<128x128xbf16>, vector<32x128xf32> -> vector<32x128xf32>
    %22 = arith.addf %16, %21 : vector<32x128xf32>
    %c0_26 = arith.constant 0 : index
    %c0_27 = arith.constant 0 : index
    %23 = vector.load %arg4[%c0_26, %c0_27] : memref<2x128xf32, #tpu.memory_space<vmem>>, vector<1x128xf32>
    %24 = vector.broadcast %23 : vector<1x128xf32> to vector<32x128xf32>
    %25 = arith.mulf %22, %24 : vector<32x128xf32>
    %c1_28 = arith.constant 1 : index
    %c0_29 = arith.constant 0 : index
    %26 = vector.load %arg4[%c1_28, %c0_29] : memref<2x128xf32, #tpu.memory_space<vmem>>, vector<1x128xf32>
    %27 = vector.broadcast %26 : vector<1x128xf32> to vector<32x128xf32>
    %28 = arith.addf %25, %27 : vector<32x128xf32>
    %cst_30 = arith.constant 0.000000e+00 : f32
    %29 = vector.broadcast %cst_30 : f32 to vector<32x128xf32>
    %30 = arith.maximumf %28, %29 : vector<32x128xf32>
    %31 = vector.shape_cast %30 : vector<32x128xf32> to vector<4x8x128xf32>
    %32 = arith.truncf %31 : vector<4x8x128xf32> to vector<4x8x128xbf16>
    %c0_31 = arith.constant 0 : index
    %c8_32 = arith.constant 8 : index
    %c0_33 = arith.constant 0 : index
    %33 = vector.load %arg9[%c0_31, %c8_32, %c0_33] : memref<4x24x128xbf16, #tpu.memory_space<vmem>>, vector<4x8x128xbf16>
    tpu.vector_store %arg9[%c0_31, %c8_32, %c0_33], %32 {strides = array<i32>} : memref<4x24x128xbf16, #tpu.memory_space<vmem>>, vector<4x8x128xbf16>,
    %c0_34 = arith.constant 0 : index
    %c7_35 = arith.constant 7 : index
    %c0_36 = arith.constant 0 : index
    %34 = vector.load %arg9[%c0_34, %c7_35, %c0_36] : memref<4x24x128xbf16, #tpu.memory_space<vmem>>, vector<4x8x128xbf16>
    %35 = vector.shape_cast %34 : vector<4x8x128xbf16> to vector<32x128xbf16>
    %c0_37 = arith.constant 0 : index
    %c0_38 = arith.constant 0 : index
    %c0_39 = arith.constant 0 : index
    %36 = vector.load %arg3[%c0_37, %c0_38, %c0_39] : memref<3x128x128xbf16, #tpu.memory_space<vmem>>, vector<1x128x128xbf16>
    %37 = vector.shape_cast %36 : vector<1x128x128xbf16> to vector<128x128xbf16>
    %cst_40 = arith.constant dense<0.000000e+00> : vector<32x128xf32>
    %38 = tpu.matmul %35, %37, %cst_40 {dimension_numbers = #tpu.dot_dimension_numbers<[1], [0], [0], [1], [0, 0, 1, 1], [], []>} : vector<32x128xbf16>, vector<128x128xbf16>, vector<32x128xf32> -> vector<32x128xf32>
    %c0_41 = arith.constant 0 : index
    %c8_42 = arith.constant 8 : index
    %c0_43 = arith.constant 0 : index
    %39 = vector.load %arg9[%c0_41, %c8_42, %c0_43] : memref<4x24x128xbf16, #tpu.memory_space<vmem>>, vector<4x8x128xbf16>
    %40 = vector.shape_cast %39 : vector<4x8x128xbf16> to vector<32x128xbf16>
    %c1_44 = arith.constant 1 : index
    %c0_45 = arith.constant 0 : index
    %c0_46 = arith.constant 0 : index
    %41 = vector.load %arg3[%c1_44, %c0_45, %c0_46] : memref<3x128x128xbf16, #tpu.memory_space<vmem>>, vector<1x128x128xbf16>
    %42 = vector.shape_cast %41 : vector<1x128x128xbf16> to vector<128x128xbf16>
    %cst_47 = arith.constant dense<0.000000e+00> : vector<32x128xf32>
    %43 = tpu.matmul %40, %42, %cst_47 {dimension_numbers = #tpu.dot_dimension_numbers<[1], [0], [0], [1], [0, 0, 1, 1], [], []>} : vector<32x128xbf16>, vector<128x128xbf16>, vector<32x128xf32> -> vector<32x128xf32>
    %44 = arith.addf %38, %43 : vector<32x128xf32>
    %c0_48 = arith.constant 0 : index
    %c9_49 = arith.constant 9 : index
    %c0_50 = arith.constant 0 : index
    %45 = vector.load %arg9[%c0_48, %c9_49, %c0_50] : memref<4x24x128xbf16, #tpu.memory_space<vmem>>, vector<4x8x128xbf16>
    %46 = vector.shape_cast %45 : vector<4x8x128xbf16> to vector<32x128xbf16>
    %c2_51 = arith.constant 2 : index
    %c0_52 = arith.constant 0 : index
    %c0_53 = arith.constant 0 : index
    %47 = vector.load %arg3[%c2_51, %c0_52, %c0_53] : memref<3x128x128xbf16, #tpu.memory_space<vmem>>, vector<1x128x128xbf16>
    %48 = vector.shape_cast %47 : vector<1x128x128xbf16> to vector<128x128xbf16>
    %cst_54 = arith.constant dense<0.000000e+00> : vector<32x128xf32>
    %49 = tpu.matmul %46, %48, %cst_54 {dimension_numbers = #tpu.dot_dimension_numbers<[1], [0], [0], [1], [0, 0, 1, 1], [], []>} : vector<32x128xbf16>, vector<128x128xbf16>, vector<32x128xf32> -> vector<32x128xf32>
    %50 = arith.addf %44, %49 : vector<32x128xf32>
    %c0_55 = arith.constant 0 : index
    %c0_56 = arith.constant 0 : index
    %51 = vector.load %arg5[%c0_55, %c0_56] : memref<2x128xf32, #tpu.memory_space<vmem>>, vector<1x128xf32>
    %52 = vector.broadcast %51 : vector<1x128xf32> to vector<32x128xf32>
    %53 = arith.mulf %50, %52 : vector<32x128xf32>
    %c1_57 = arith.constant 1 : index
    %c0_58 = arith.constant 0 : index
    %54 = vector.load %arg5[%c1_57, %c0_58] : memref<2x128xf32, #tpu.memory_space<vmem>>, vector<1x128xf32>
    %55 = vector.broadcast %54 : vector<1x128xf32> to vector<32x128xf32>
    %56 = arith.addf %53, %55 : vector<32x128xf32>
    %57 = vector.shape_cast %56 : vector<32x128xf32> to vector<4x8x128xf32>
    %cst_59 = arith.constant dense<0.000000e+00> : vector<4x128xf32>
    %58 = vector.multi_reduction <add>, %57, %cst_59 [1] : vector<4x8x128xf32> to vector<4x128xf32>
    %cst_60 = arith.constant 1.562500e-02 : f32
    %59 = vector.broadcast %cst_60 : f32 to vector<4x128xf32>
    %60 = arith.mulf %58, %59 : vector<4x128xf32>
    %61 = arith.truncf %60 : vector<4x128xf32> to vector<4x128xbf16>
    %c0_61 = arith.constant 0 : index
    %c0_62 = arith.constant 0 : index
    %62 = vector.load %arg6[%c0_61, %c0_62] : memref<128x4xbf16, #tpu.memory_space<vmem>>, vector<128x4xbf16>
    %cst_63 = arith.constant dense<0.000000e+00> : vector<4x4xf32>
    %63 = tpu.matmul %61, %62, %cst_63 {dimension_numbers = #tpu.dot_dimension_numbers<[1], [0], [0], [1], [0, 0, 1, 1], [], []>} : vector<4x128xbf16>, vector<128x4xbf16>, vector<4x4xf32> -> vector<4x4xf32>
    %cst_64 = arith.constant 0.000000e+00 : f32
    %64 = vector.broadcast %cst_64 : f32 to vector<4x4xf32>
    %65 = arith.maximumf %63, %64 : vector<4x4xf32>
    %66 = arith.truncf %65 : vector<4x4xf32> to vector<4x4xbf16>
    %c0_65 = arith.constant 0 : index
    %c0_66 = arith.constant 0 : index
    %67 = vector.load %arg7[%c0_65, %c0_66] : memref<4x128xbf16, #tpu.memory_space<vmem>>, vector<4x128xbf16>
    %cst_67 = arith.constant dense<0.000000e+00> : vector<4x128xf32>
    %68 = tpu.matmul %66, %67, %cst_67 {dimension_numbers = #tpu.dot_dimension_numbers<[1], [0], [0], [1], [0, 0, 1, 1], [], []>} : vector<4x4xbf16>, vector<4x128xbf16>, vector<4x128xf32> -> vector<4x128xf32>
    %69 = arith.negf %68 : vector<4x128xf32>
    %70 = math.exp %69 : vector<4x128xf32>
    %cst_68 = arith.constant 1.000000e+00 : f32
    %71 = vector.broadcast %cst_68 : f32 to vector<4x128xf32>
    %72 = arith.addf %71, %70 : vector<4x128xf32>
    %73 = arith.divf %71, %72 : vector<4x128xf32>
    %74 = vector.shape_cast %73 : vector<4x128xf32> to vector<4x1x128xf32>
    %75 = vector.broadcast %74 : vector<4x1x128xf32> to vector<4x8x128xf32>
    %76 = arith.mulf %57, %75 : vector<4x8x128xf32>
    %c0_69 = arith.constant 0 : index
    %c0_70 = arith.constant 0 : index
    %c0_71 = arith.constant 0 : index
    %77 = vector.load %arg1[%c0_69, %c0_70, %c0_71] : memref<4x8x128xf32, #tpu.memory_space<vmem>>, vector<4x8x128xf32>
    %78 = arith.addf %76, %77 : vector<4x8x128xf32>
    %cst_72 = arith.constant 0.000000e+00 : f32
    %79 = vector.broadcast %cst_72 : f32 to vector<4x8x128xf32>
    %80 = arith.maximumf %78, %79 : vector<4x8x128xf32>
    %c0_73 = arith.constant 0 : index
    %c0_74 = arith.constant 0 : index
    %c0_75 = arith.constant 0 : index
    %81 = vector.load %arg8[%c0_73, %c0_74, %c0_75] : memref<4x8x128xf32, #tpu.memory_space<vmem>>, vector<4x8x128xf32>
    tpu.vector_store %arg8[%c0_73, %c0_74, %c0_75], %80 {strides = array<i32>} : memref<4x8x128xf32, #tpu.memory_space<vmem>>, vector<4x8x128xf32>,
    return
  }
  func.func @transform_0(%arg0: i32) -> (i32, i32, i32) {
    %c0_i32 = arith.constant 0 : i32
    %c0_i32_0 = arith.constant 0 : i32
    %c0_i32_1 = arith.constant 0 : i32
    return %arg0, %c0_i32, %c0_i32_0 : i32, i32, i32
  }
  func.func @transform_1(%arg0: i32) -> (i32, i32, i32) {
    %c0_i32 = arith.constant 0 : i32
    %c0_i32_0 = arith.constant 0 : i32
    %c0_i32_1 = arith.constant 0 : i32
    %c0_i32_2 = arith.constant 0 : i32
    return %c0_i32, %c0_i32_0, %c0_i32_1 : i32, i32, i32
  }
  func.func @transform_2(%arg0: i32) -> (i32, i32, i32) {
    %c0_i32 = arith.constant 0 : i32
    %c0_i32_0 = arith.constant 0 : i32
    %c0_i32_1 = arith.constant 0 : i32
    %c0_i32_2 = arith.constant 0 : i32
    return %c0_i32, %c0_i32_0, %c0_i32_1 : i32, i32, i32
  }
  func.func @transform_3(%arg0: i32) -> (i32, i32) {
    %c0_i32 = arith.constant 0 : i32
    %c0_i32_0 = arith.constant 0 : i32
    %c0_i32_1 = arith.constant 0 : i32
    return %c0_i32, %c0_i32_0 : i32, i32
  }
  func.func @transform_4(%arg0: i32) -> (i32, i32) {
    %c0_i32 = arith.constant 0 : i32
    %c0_i32_0 = arith.constant 0 : i32
    %c0_i32_1 = arith.constant 0 : i32
    return %c0_i32, %c0_i32_0 : i32, i32
  }
  func.func @transform_5(%arg0: i32) -> (i32, i32) {
    %c0_i32 = arith.constant 0 : i32
    %c0_i32_0 = arith.constant 0 : i32
    %c0_i32_1 = arith.constant 0 : i32
    return %c0_i32, %c0_i32_0 : i32, i32
  }
  func.func @transform_6(%arg0: i32) -> (i32, i32) {
    %c0_i32 = arith.constant 0 : i32
    %c0_i32_0 = arith.constant 0 : i32
    %c0_i32_1 = arith.constant 0 : i32
    return %c0_i32, %c0_i32_0 : i32, i32
  }
  func.func @transform_7(%arg0: i32) -> (i32, i32, i32) {
    %c0_i32 = arith.constant 0 : i32
    %c0_i32_0 = arith.constant 0 : i32
    %c0_i32_1 = arith.constant 0 : i32
    return %arg0, %c0_i32, %c0_i32_0 : i32, i32, i32
  }
}

</mosaic_0001>

<bundles_post_ra>
// kernel: tpu_custom_call.1
= control target key start
LH: loop header
LB: loop body
LE: loop exit
PB: predicated region body
PF: predicated region fallthrough
CT: control target
= control target key end

     0   :  { %12 = vsyncpa [#allocation4], 0  ;;  %s2169_s0 = inlined_call_operand.vmem [shape: f32[4,8,128], index: 0, kind: input, shape index: {}]   ;;  %s2170_s1 = inlined_call_operand.hbm [shape: bf16[3,128,128], index: 1, kind: input, shape index: {}]   ;;  %s2171_s2 = inlined_call_operand.hbm [shape: bf16[3,128,128], index: 2, kind: input, shape index: {}]   ;;  %s2172_s3 = inlined_call_operand.vmem [shape: f32[2,128], index: 3, kind: input, shape index: {}]   ;;  %s2173_s4 = inlined_call_operand.vmem [shape: f32[2,128], index: 4, kind: input, shape index: {}]   ;;  %s2174_s5 = inlined_call_operand.vmem [shape: bf16[128,4], index: 5, kind: input, shape index: {}]   ;;  %s2175_s6 = inlined_call_operand.vmem [shape: bf16[4,128], index: 6, kind: input, shape index: {}]   ;;  %s2176_s7 = inlined_call_operand.hbm [shape: f32[4,8,128], index: 7, kind: output, shape index: {}]  }
   0x1   :  { %13 = vsyncpa [#allocation7], 0 }
   0x2   :  { %14 = vsyncpa [#allocation5], 0  ;;  %s1898_s24 = smov [#allocation3]   ;;  %s1826_s28 = scalar_lea.hbm %s2170_s1, 3072 }
   0x3   :  { %s22_s25 = sshll.u32 %s1898_s24, 4  ;;  %p1827_p0 = scmp.ne.s32.totalorder %s2170_s1, %s1826_s28  ;;  %s23_s25 = int_to_ptr.vmem [resolvable:$true] %s22_s25 }
   0x4   :  { %p1830_p1 = scmp.lt.u32.totalorder %s1826_s28, %s2170_s1 }
   0x6   :  { %p1832_p2 = pnand %p1830_p1, %p1827_p0 }
   0x8   :  { %1835 = shalt.err (!%p1832_p2)
}
   0x9   :  { %s1836_s10 = scalar_lea.vmem %s23_s25, 3072  ;;  %p1841_p4 = scmp.lt.s32.totalorder %s23_s25, %s23_s25 }
   0xa   :  { %p1837_p3 = scmp.ne.s32.totalorder %s23_s25, %s1836_s10  ;;  %p1842_p5 = scmp.lt.s32.totalorder %s1836_s10, %s1836_s10 }
   0xc   :  { %p1843_p6 = por %p1842_p5, %p1841_p4 }
   0xe   :  { %p1844_p7 = pnand %p1843_p6, %p1837_p3 }
  0x10   :  { %1847 = shalt.err (!%p1844_p7)
}
  0x11   :  { %s1899_s11 = smov 64   ;;  %s1900_s12 = smov 4  }
  0x12   :  { %28 = dma.hbm_to_vmem [thread:$0]  %s2170_s1, 3072, %s23_s25, [#allocation4], %s1899_s11, %s1899_s11, %s1900_s12  }
  0x13   :  { %s1901_s15 = smov [#allocation6]   ;;  %s1848_s19 = scalar_lea.hbm %s2171_s2, 3072 }
  0x14   :  { %s34_s16 = sshll.u32 %s1901_s15, 4  ;;  %p1849_p8 = scmp.ne.s32.totalorder %s2171_s2, %s1848_s19  ;;  %s35_s16 = int_to_ptr.vmem [resolvable:$true] %s34_s16 }
  0x15   :  { %p1852_p9 = scmp.lt.u32.totalorder %s1848_s19, %s2171_s2 }
  0x17   :  { %p1854_p10 = pnand %p1852_p9, %p1849_p8 }
  0x19   :  { %1857 = shalt.err (!%p1854_p10)
}
  0x1a   :  { %s1858_s24 = scalar_lea.vmem %s35_s16, 3072  ;;  %p1863_p12 = scmp.lt.s32.totalorder %s35_s16, %s35_s16 }
  0x1b   :  { %p1859_p11 = scmp.ne.s32.totalorder %s35_s16, %s1858_s24  ;;  %p1864_p13 = scmp.lt.s32.totalorder %s1858_s24, %s1858_s24 }
  0x1d   :  { %p1865_p0 = por %p1864_p13, %p1863_p12 }
  0x1f   :  { %p1866_p1 = pnand %p1865_p0, %p1859_p11 }
  0x21   :  { %1869 = shalt.err (!%p1866_p1)
}
  0x22   :  { %40 = dma.hbm_to_vmem [thread:$0]  %s2171_s2, 3072, %s35_s16, [#allocation7], %s1899_s11, %s1899_s11, %s1900_s12  }
  0x23   :  { %1892 = dma.done.wait [#allocation4], 3072  }
  0x24   :  { %1893 = vsyncadd [#allocation4], 4294964224 }
  0x25   :  { %1894 = dma.done.wait [#allocation7], 3072  }
  0x26   :  { %1895 = vsyncadd [#allocation7], 4294964224  ;;  %v1762_v0 = vld [vmem:[#allocation3 + $0x40] sm:$0xff]   ;;  %v1763_v1 = vld [vmem:[#allocation3 + $0x48] sm:$0xff]   ;;  %vm57_vm0 = vsmask.f32 7950 }
  0x27   :  { %1590 = vmatprep.subr.bf16.mxu0 %v1762_v0  ;;  %v1764_v2 = vld [vmem:[#allocation3 + $0x50] sm:$0xff]   ;;  %v1765_v3 = vld [vmem:[#allocation3 + $0x58] sm:$0xff]   ;;  %v88_v8 = vld [vmem:[%s2169_s0 + $0x10] sm:$0xff]  ;;  %vm56_vm1 = vcmask 1043459   ;;  %vm71_vm3 = vcmask 1040384   ;;  %vm1903_vm11 = vmmov 0  }
  0x28   :  { %1591 = vmatpush3.bf16.msra.mxu0 %v1762_v0  ;;  %v86_v4 = vld [vmem:[%s2169_s0] sm:$0xff]  ;;  %v87_v5 = vld [vmem:[%s2169_s0 + $0x8] sm:$0xff]  ;;  %v89_v9 = vld [vmem:[%s2169_s0 + $0x18] sm:$0xff]  ;;  %v92_v10 = vpack.c.bf16 %v88_v8, %v88_v8  ;;  %vm72_vm4 = vsmask.f32 256  ;;  %vm1304_vm12 = vcmask 1041408  }
  0x29   :  { %1592 = vmatprep.subr.bf16.mxu0 %v1763_v1  ;;  %v90_v6 = vpack.c.bf16 %v86_v4, %v86_v4  ;;  %v91_v7 = vpack.c.bf16 %v87_v5, %v87_v5  ;;  %v93_v11 = vpack.c.bf16 %v89_v9, %v89_v9  ;;  %v1766_v12 = vld [vmem:[#allocation3 + $0x60] sm:$0xff]   ;;  %vm1985_vm2 = vmand %vm56_vm1, %vm57_vm0  ;;  %v1767_v14 = vld [vmem:[#allocation3 + $0x68] sm:$0xff]   ;;  %vm106_vm6 = vsmask.f32 4368  ;;  %s1905_s14 = smov [#allocation8]  }
  0x2a   :  { %96 = vst [vmem:[#allocation2 + $0x1c] sm:$0xf] %v92_v10  ;;  %v59_v15 = vld [vmem:[#allocation2] sm:$0x8]  ;;  %v62_v16 = vld [vmem:[#allocation2 + $0xc] sm:$0x8]  ;;  %vm1994_vm5 = vmand %vm71_vm3, %vm72_vm4 }
  0x2b   :  { %94 = vst [vmem:[#allocation2 + $0x4] sm:$0xf] %v90_v6  ;;  %95 = vst [vmem:[#allocation2 + $0x10] sm:$0xf] %v91_v7  ;;  %v60_v19 = vsel %vm1985_vm2, 0, %v59_v15  ;;  %v63_v20 = vsel %vm1985_vm2, 0, %v62_v16 }
  0x2c   :  { %1593 = vmatpush3.bf16.msra.mxu0 %v1763_v1  ;;  %97 = vst [vmem:[#allocation2 + $0x28] sm:$0xf] %v93_v11  ;;  %61 = vst [vmem:[#allocation2] sm:$0x8] %v60_v19  ;;  %v1768_v24 = vld [vmem:[#allocation3 + $0x70] sm:$0xff]   ;;  %v1769_v37 = vld [vmem:[#allocation3 + $0x78] sm:$0xff]  }
  0x2d   :  { %1594 = vmatprep.subr.bf16.mxu0 %v1764_v2  ;;  %64 = vst [vmem:[#allocation2 + $0xc] sm:$0x8] %v63_v20  ;;  %v74_v26 = vld [vmem:[#allocation2 + $0x8] sm:$0x1]  ;;  %v77_v28 = vld [vmem:[#allocation2 + $0x14] sm:$0x1]  ;;  %vm2016_vm7 = vmor %vm72_vm4, %vm106_vm6 }
  0x2e   :  { %v75_v31 = vsel %vm1994_vm5, 0, %v74_v26  ;;  %v78_v32 = vsel %vm1994_vm5, 0, %v77_v28  ;;  %v80_v33 = vld [vmem:[#allocation2 + $0x20] sm:$0x1]  ;;  %v83_v36 = vld [vmem:[#allocation2 + $0x2c] sm:$0x1] }
  0x2f   :  { %76 = vst [vmem:[#allocation2 + $0x8] sm:$0x1] %v75_v31  ;;  %79 = vst [vmem:[#allocation2 + $0x14] sm:$0x1] %v78_v32  ;;  %v81_v35 = vsel %vm1994_vm5, 0, %v80_v33  ;;  %v84_v38 = vsel %vm1994_vm5, 0, %v83_v36 }
  0x30   :  { %1595 = vmatpush3.bf16.msra.mxu0 %v1764_v2  ;;  %82 = vst [vmem:[#allocation2 + $0x20] sm:$0x1] %v81_v35  ;;  %v65_v39 = vld [vmem:[#allocation2 + $0x18] sm:$0x8]  ;;  %85 = vst [vmem:[#allocation2 + $0x2c] sm:$0x1] %v84_v38 }
  0x31   :  { %1596 = vmatprep.subr.bf16.mxu0 %v1765_v3  ;;  %v2006_v40 = vld [vmem:[#allocation2 + $0x1c] sm:$0xf]  ;;  %v66_v42 = vsel %vm1985_vm2, 0, %v65_v39  ;;  %v68_v43 = vld [vmem:[#allocation2 + $0x24] sm:$0x8]  ;;  %v1771_v44 = vld [vmem:[#allocation3] sm:$0xff]  }
  0x32   :  { %v99_v17 = vld [vmem:[#allocation2 + $0x4] sm:$0xf]  ;;  %v101_v18 = vld [vmem:[#allocation2 + $0x10] sm:$0xf]  ;;  %67 = vst [vmem:[#allocation2 + $0x18] sm:$0x8] %v66_v42 }
  0x33   :  { %v114_v21 = vshrl.u32 %v99_v17, 16  ;;  %v127_v22 = vshrl.u32 %v101_v18, 16  ;;  %v1441_v25 = vcombine.low %v99_v17, %v101_v18  ;;  %v117_v27 = vshll.u32 %v99_v17, 16  ;;  %v2008_v41 = vld [vmem:[#allocation2 + $0x28] sm:$0xf]  ;;  %v1773_v58 = vld [vmem:[#allocation3 + $0x8] sm:$0xff]  }
  0x34   :  { %1597 = vmatpush3.bf16.msra.mxu0 %v1765_v3  ;;  %v130_v30 = vshll.u32 %v101_v18, 16  ;;  %v98_v45 = vld [vmem:[#allocation2] sm:$0x8]  ;;  %v100_v46 = vld [vmem:[#allocation2 + $0xc] sm:$0x8]  ;;  %v69_v47 = vsel %vm1985_vm2, 0, %v68_v43  ;;  %v1442_v55 = vcombine.low %v2006_v40, %v2008_v41 }
  0x35   :  { %1598 = vmatprep.subr.bf16.mxu0 %v1766_v12  ;;  %v116_v29 = vrot.slane %v114_v21, 7  ;;  %1606 = vmatprep.mubr.bf16.mxu0 %v1441_v25  ;;  %v129_v34 = vrot.slane %v127_v22, 7  ;;  %v109_v49 = vshrl.u32 %v98_v45, 16  ;;  %v122_v51 = vshrl.u32 %v100_v46, 16  ;;  %70 = vst [vmem:[#allocation2 + $0x24] sm:$0x8] %v69_v47 }
  0x36   :  { %v407_v60 = vld [vmem:[#allocation2 + $0x4] sm:$0xf]  ;;  %v409_v63 = vld [vmem:[#allocation2 + $0x10] sm:$0xf]  ;;  %v140_v3 = vshrl.u32 %v2006_v40, 16  ;;  %v153_v4 = vshrl.u32 %v2008_v41, 16 }
  0x37   :  { %v119_v50 = vor.u32 %v117_v27, %v116_v29  ;;  %v132_v52 = vor.u32 %v130_v30, %v129_v34  ;;  %v1437_v53 = vrot.slane %v109_v49, 11  ;;  %v1438_v54 = vrot.slane %v122_v51, 11  ;;  %v1774_v1 = vld [vmem:[#allocation3 + $0x10] sm:$0xff]   ;;  %v408_v8 = vld [vmem:[#allocation2 + $0x8] sm:$0x1]  ;;  %v1788_v16 = vld [vmem:[#allocation6 + $0x40] sm:$0xff]  }
  0x38   :  { %1599 = vmatpush3.bf16.msra.mxu0 %v1766_v12  ;;  %v419_v62 = vshrl.u32 %v407_v60, 16  ;;  %v422_v0 = vshll.u32 %v407_v60, 16  ;;  %v433_v2 = vshrl.u32 %v409_v63, 16  ;;  %v436_v7 = vshll.u32 %v409_v63, 16  ;;  %v410_v9 = vld [vmem:[#allocation2 + $0x14] sm:$0x1]  ;;  %1650 = vmatprep.subr.bf16.mxu1 %v1788_v16 }
  0x39   :  { %1600 = vmatprep.subr.bf16.mxu0 %v1767_v14  ;;  %v120_v56 = vsel %vm2016_vm7, %v1437_v53, %v119_v50  ;;  %v133_v57 = vsel %vm2016_vm7, %v1438_v54, %v132_v52  ;;  %v102_v61 = vld [vmem:[#allocation2 + $0x18] sm:$0x8]  ;;  %vm415_vm8 = vsmask.f32 3328  ;;  %v143_v17 = vshll.u32 %v2006_v40, 16  ;;  %1651 = vmatpush3.bf16.msra.mxu1 %v1788_v16  ;;  %v1790_v29 = vld [vmem:[#allocation6 + $0x50] sm:$0xff]  }
  0x3a   :  { %v1451_v59 = vcombine.low %v120_v56, %v133_v57  ;;  %v135_v6 = vshrl.u32 %v102_v61, 16  ;;  %v421_v10 = vrot.slane %v419_v62, 4  ;;  %v424_v11 = vrot.slane %v422_v0, 5  ;;  %v1789_v18 = vld [vmem:[#allocation6 + $0x48] sm:$0xff]   ;;  %v1778_v36 = vld [vmem:[#allocation3 + $0x30] sm:$0xff]   ;;  %v1780_v40 = vld [vmem:[#allocation3 + $0x80] sm:$0xff]  }
  0x3b   :  { %v435_v12 = vrot.slane %v433_v2, 4  ;;  %v438_v13 = vrot.slane %v436_v7, 5  ;;  %vm416_vm9 = vsmask.f32 7440  ;;  %v142_v19 = vrot.slane %v140_v3, 7  ;;  %1652 = vmatprep.subr.bf16.mxu1 %v1789_v18  ;;  %v1777_v30 = vld [vmem:[#allocation3 + $0x28] sm:$0xff]  }
  0x3c   :  { %1601 = vmatpush3.bf16.msra.mxu0 %v1767_v14  ;;  %v104_v5 = vld [vmem:[#allocation2 + $0x24] sm:$0x8]  ;;  %v1775_v14 = vld [vmem:[#allocation3 + $0x18] sm:$0xff]   ;;  %v156_v20 = vshll.u32 %v2008_v41, 16  ;;  %v428_v21 = vshll.u32 %v408_v8, 16  ;;  %v442_v22 = vshll.u32 %v410_v9, 16  ;;  %v425_v26 = vor.u32 %v424_v11, %v421_v10  ;;  %vm2032_vm10 = vmor %vm415_vm8, %vm416_vm9 }
  0x3d   :  { %1602 = vmatprep.subr.bf16.mxu0 %v1768_v24  ;;  %v148_v15 = vshrl.u32 %v104_v5, 16  ;;  %v155_v23 = vrot.slane %v153_v4, 7  ;;  %v1439_v25 = vrot.slane %v135_v6, 11  ;;  %v439_v27 = vor.u32 %v438_v13, %v435_v12  ;;  %1653 = vmatpush3.bf16.msra.mxu1 %v1789_v18  ;;  %v1781_v47 = vld [vmem:[#allocation3 + $0x88] sm:$0xff]   ;;  %v1782_v49 = vld [vmem:[#allocation3 + $0x90] sm:$0xff]   ;;  %v1783_v50 = vld [vmem:[#allocation3 + $0x98] sm:$0xff]  }
  0x3e   :  { %v430_v31 = vrot.slane %v428_v21, 5  ;;  %v444_v32 = vrot.slane %v442_v22, 5  ;;  %v426_v33 = vrot.slane %v425_v26, 4  ;;  %1654 = vmatprep.subr.bf16.mxu1 %v1790_v29  ;;  %v145_v38 = vor.u32 %v143_v17, %v142_v19  ;;  %v411_v51 = vld [vmem:[#allocation2 + $0x1c] sm:$0xf]  ;;  %v1784_v57 = vld [vmem:[#allocation3 + $0xa0] sm:$0xff]  }
  0x3f   :  { %v1440_v28 = vrot.slane %v148_v15, 11  ;;  %v440_v34 = vrot.slane %v439_v27, 4  ;;  %v158_v39 = vor.u32 %v156_v20, %v155_v23  ;;  %v413_v52 = vld [vmem:[#allocation2 + $0x28] sm:$0xf]  ;;  %v447_v53 = vshrl.u32 %v411_v51, 16  ;;  %v1785_v62 = vld [vmem:[#allocation3 + $0xa8] sm:$0xff]  }
  0x40   :  { %1603 = vmatpush3.bf16.msra.mxu0 %v1768_v24  ;;  %v1776_v24 = vld [vmem:[#allocation3 + $0x20] sm:$0xff]   ;;  %v146_v41 = vsel %vm2016_vm7, %v1439_v25, %v145_v38  ;;  %v431_v43 = vsel %vm2032_vm10, %v426_v33, %v430_v31  ;;  %v450_v54 = vshll.u32 %v411_v51, 16  ;;  %v464_v56 = vshll.u32 %v413_v52, 16  ;;  %v412_v63 = vld [vmem:[#allocation2 + $0x20] sm:$0x1]  ;;  %v1787_v10 = vld [vmem:[#allocation3 + $0xb8] sm:$0xff]  }
  0x41   :  { %1604 = vmatprep.subr.bf16.mxu0 %v1769_v37  ;;  %1655 = vmatpush3.bf16.msra.mxu1 %v1790_v29  ;;  %v159_v42 = vsel %vm2016_vm7, %v1440_v28, %v158_v39  ;;  %v414_v0 = vld [vmem:[#allocation2 + $0x2c] sm:$0x1]  ;;  %v456_v2 = vshll.u32 %v412_v63, 16  ;;  %v1786_v5 = vld [vmem:[#allocation3 + $0xb0] sm:$0xff]   ;;  %v1792_v15 = vld [vmem:[#allocation6 + $0x60] sm:$0xff]   ;;  %v1902_v20 = vmov 0.0  }
  0x42   :  { %v1452_v45 = vcombine.low %v146_v41, %v159_v42  ;;  %v466_v61 = vrot.slane %v464_v56, 5  ;;  %v470_v4 = vshll.u32 %v414_v0, 16  ;;  %v1793_v16 = vld [vmem:[#allocation6 + $0x68] sm:$0xff]   ;;  %v1794_v17 = vld [vmem:[#allocation6 + $0x70] sm:$0xff]   ;;  %v1795_v18 = vld [vmem:[#allocation6 + $0x78] sm:$0xff]   ;;  %vm1201_vm13 = vcmask 1041409  }
  0x43   :  { %v458_v7 = vrot.slane %v456_v2, 5  ;;  %v1797_v19 = vld [vmem:[#allocation6] sm:$0xff]   ;;  %v1471_v21 = vld [vmem:[%s2172_s3] ss:$0 sm:$0xff]  ;;  %v1472_v23 = vld [vmem:[%s2172_s3 + $0x1] ss:$0 sm:$0xff] }
  0x44   :  { %1605 = vmatpush3.bf16.msra.mxu0 %v1769_v37  ;;  %v1779_v37 = vld [vmem:[#allocation3 + $0x38] sm:$0xff]   ;;  %v472_v9 = vrot.slane %v470_v4, 5  ;;  %v1800_v2 = vld [vmem:[#allocation6 + $0x10] sm:$0xff]   ;;  %v1810_v48 = vld [vmem:[#allocation6 + $0xa0] sm:$0xff]   ;;  %vm1203_vm14 = vcmask 1042434   ;;  %vm1300_vm15 = vcmask 31744  }
  0x45   :  { %1610 = vmatprep.subr.bf16.mxu0 %v1771_v44  ;;  %v1816_v35 = vld [vmem:[%s2174_s5 + $0x10] sm:$0xff]   ;;  %s1424_s15 = sshll.u32 %s1905_s14, 4  ;;  %s1425_s15 = int_to_ptr.vmem [resolvable:$true] %s1424_s15 }
  0x46   :  { %s1870_s16 = scalar_lea.vmem %s1425_s15, 512  ;;  %p1875_p3 = scmp.lt.s32.totalorder %s1425_s15, %s1425_s15 }
  0x47   :  { %1607 = vmatmul.mubr.bf16.vlgmr.msra.gmra.mrb[0].mxu0 %v1442_v55  ;;  %v461_v55 = vshrl.u32 %v413_v52, 16  ;;  %p1871_p2 = scmp.ne.s32.totalorder %s1425_s15, %s1870_s16  ;;  %p1876_p4 = scmp.lt.s32.totalorder %s1870_s16, %s1870_s16 }
  0x48   :  { %1611 = vmatpush3.bf16.msra.mxu0 %v1771_v44  ;;  %1626 = vmatprep.mubr.bf16.mxu0 %v1451_v59  ;;  %v445_v44 = vsel %vm2032_vm10, %v440_v34, %v444_v32  ;;  %v452_v59 = vrot.slane %v450_v54, 5 }
  0x49   :  { %1612 = vmatprep.subr.bf16.mxu0 %v1773_v58  ;;  %v1461_v46 = vcombine.low %v431_v43, %v445_v44  ;;  %v463_v60 = vrot.slane %v461_v55, 4  ;;  %v630_v44 = vld [vmem:[#allocation2] sm:$0x8]  ;;  %p1877_p5 = por %p1876_p4, %p1875_p3 }
  0x4b   :  { %v467_v3 = vor.u32 %v466_v61, %v463_v60  ;;  %p1878_p6 = pnand %p1877_p5, %p1871_p2 }
  0x4c   :  { %1613 = vmatpush3.bf16.msra.mxu0 %v1773_v58  ;;  %v449_v58 = vrot.slane %v447_v53, 4 }
  0x4d   :  { %1614 = vmatprep.subr.bf16.mxu0 %v1774_v1  ;;  %v468_v8 = vrot.slane %v467_v3, 4 }
  0x4f   :  { %v473_v12 = vsel %vm2032_vm10, %v468_v8, %v472_v9  ;;  %v1802_v8 = vld [vmem:[#allocation6 + $0x20] sm:$0xff]  }
  0x50   :  { %1615 = vmatpush3.bf16.msra.mxu0 %v1774_v1  ;;  %v453_v1 = vor.u32 %v452_v59, %v449_v58  ;;  %v1799_v59 = vld [vmem:[#allocation6 + $0x8] sm:$0xff]  }
  0x51   :  { %1616 = vmatprep.subr.bf16.mxu0 %v1775_v14 }
  0x52   :  { %v454_v6 = vrot.slane %v453_v1, 4 }
  0x54   :  { %1617 = vmatpush3.bf16.msra.mxu0 %v1775_v14  ;;  %v459_v11 = vsel %vm2032_vm10, %v454_v6, %v458_v7  ;;  %v1791_v14 = vld [vmem:[#allocation6 + $0x58] sm:$0xff]  }
  0x55   :  { %1618 = vmatprep.subr.bf16.mxu0 %v1776_v24  ;;  %v1462_v13 = vcombine.low %v459_v11, %v473_v12  ;;  %1656 = vmatprep.subr.bf16.mxu1 %v1791_v14  ;;  %v1801_v6 = vld [vmem:[#allocation6 + $0x18] sm:$0xff]   ;;  %v1803_v12 = vld [vmem:[#allocation6 + $0x28] sm:$0xff]  }
  0x56   :  { %1657 = vmatpush3.bf16.msra.mxu1 %v1791_v14 }
  0x57   :  { %1658 = vmatprep.subr.bf16.mxu1 %v1792_v15 }
  0x58   :  { %1619 = vmatpush3.bf16.msra.mxu0 %v1776_v24 }
  0x59   :  { %1620 = vmatprep.subr.bf16.mxu0 %v1777_v30 }
  0x5a   :  { %1659 = vmatpush3.bf16.msra.mxu1 %v1792_v15 }
  0x5b   :  { %1660 = vmatprep.subr.bf16.mxu1 %v1793_v16 }
  0x5c   :  { %1621 = vmatpush3.bf16.msra.mxu0 %v1777_v30 }
  0x5d   :  { %1622 = vmatprep.subr.bf16.mxu0 %v1778_v36 }
  0x5e   :  { %1661 = vmatpush3.bf16.msra.mxu1 %v1793_v16  ;;  %v636_v16 = vld [vmem:[#allocation2 + $0x24] sm:$0x8] }
  0x5f   :  { %1662 = vmatprep.subr.bf16.mxu1 %v1794_v17 }
  0x60   :  { %1623 = vmatpush3.bf16.msra.mxu0 %v1778_v36 }
  0x61   :  { %1624 = vmatprep.subr.bf16.mxu0 %v1779_v37 }
  0x62   :  { %1663 = vmatpush3.bf16.msra.mxu1 %v1794_v17 }
  0x63   :  { %1664 = vmatprep.subr.bf16.mxu1 %v1795_v18 }
  0x64   :  { %1625 = vmatpush3.bf16.msra.mxu0 %v1779_v37 }
  0x65   :  { %1630 = vmatprep.subr.bf16.mxu0 %v1780_v40 }
  0x66   :  { %1665 = vmatpush3.bf16.msra.mxu1 %v1795_v18 }
  0x67   :  { %1627 = vmatmul.mubr.bf16.vlgmr.msra.gmra.mrb[0].mxu0 %v1452_v45  ;;  %1670 = vmatprep.subr.bf16.mxu1 %v1797_v19  ;;  %v632_v45 = vld [vmem:[#allocation2 + $0xc] sm:$0x8] }
  0x68   :  { %1631 = vmatpush3.bf16.msra.mxu0 %v1780_v40  ;;  %1646 = vmatprep.mubr.bf16.mxu0 %v1461_v46  ;;  %v652_v51 = vshrl.u32 %v632_v45, 16  ;;  %v1806_v45 = vld [vmem:[#allocation6 + $0x80] sm:$0xff]  }
  0x69   :  { %1632 = vmatprep.subr.bf16.mxu0 %v1781_v47 }
  0x6a   :  { %v1474_v0 = vrot.slane %v652_v51, 11 }
  0x6c   :  { %1633 = vmatpush3.bf16.msra.mxu0 %v1781_v47  ;;  %v639_v47 = vshrl.u32 %v630_v44, 16 }
  0x6d   :  { %1634 = vmatprep.subr.bf16.mxu0 %v1782_v49 }
  0x6e   :  { %v1473_v60 = vrot.slane %v639_v47, 11 }
  0x70   :  { %1635 = vmatpush3.bf16.msra.mxu0 %v1782_v49 }
  0x71   :  { %1636 = vmatprep.subr.bf16.mxu0 %v1783_v50 }
  0x74   :  { %1637 = vmatpush3.bf16.msra.mxu0 %v1783_v50 }
  0x75   :  { %1638 = vmatprep.subr.bf16.mxu0 %v1784_v57 }
  0x78   :  { %1639 = vmatpush3.bf16.msra.mxu0 %v1784_v57 }
  0x79   :  { %1640 = vmatprep.subr.bf16.mxu0 %v1785_v62 }
  0x7c   :  { %1641 = vmatpush3.bf16.msra.mxu0 %v1785_v62 }
  0x7d   :  { %1642 = vmatprep.subr.bf16.mxu0 %v1786_v5 }
  0x80   :  { %1643 = vmatpush3.bf16.msra.mxu0 %v1786_v5 }
  0x81   :  { %1644 = vmatprep.subr.bf16.mxu0 %v1787_v10 }
  0x84   :  { %1645 = vmatpush3.bf16.msra.mxu0 %v1787_v10 }
  0x85   :  { %1710 = vmatprep.subr.bf16.mxu0 %v1902_v20 }
  0x87   :  { %1647 = vmatmul.mubr.bf16.vlgmr.msra.gmra.mrb[0].mxu0 %v1462_v13 }
  0x88   :  { %1726 = vmatprep.mubr.msk.bf16.mxu0 %vm1903_vm11, %v1902_v20 }
 0x15a   :  { %v1648_v22 = vpop.f32.mrb[0].mxu0 }
 0x15b   :  { %v607_v24 = vmul.f32 %v1648_v22, %v1471_v21  ;;  %v581_v25 = vpop.f32.mrb[1].mxu0  ;;  %v1804_v22 = vld [vmem:[#allocation6 + $0x30] sm:$0xff]  }
 0x15c   :  { %v605_v26 = vmul.f32 %v1471_v21, %v581_v25  ;;  %v1649_v27 = vpop.f32.mrb[2].mxu0 }
 0x15d   :  { %v616_v28 = vadd.f32 %v1472_v23, %v607_v24  ;;  %v608_v29 = vmul.f32 %v1649_v27, %v1471_v21  ;;  %v584_v30 = vpop.f32.mrb[3].mxu0  ;;  %v678_v27 = vshrl.u32 %v636_v16, 16 }
 0x15e   :  { %v614_v31 = vadd.f32 %v1472_v23, %v605_v26  ;;  %v606_v32 = vmul.f32 %v1471_v21, %v584_v30  ;;  %v940_v21 = vld [vmem:[#allocation2 + $0x14] sm:$0x1] }
 0x15f   :  { %v620_v33 = vmax.f32 %v616_v28, 0.0  ;;  %v617_v34 = vadd.f32 %v1472_v23, %v608_v29  ;;  %v938_v28 = vld [vmem:[#allocation2 + $0x8] sm:$0x1]  ;;  %v969_v30 = vshll.u32 %v940_v21, 16  ;;  %v1814_v21 = vld [vmem:[%s2174_s5] sm:$0xff]  }
 0x160   :  { %v618_v36 = vmax.f32 %v614_v31, 0.0  ;;  %v615_v37 = vadd.f32 %v1472_v23, %v606_v32  ;;  %v634_v23 = vld [vmem:[#allocation2 + $0x18] sm:$0x8]  ;;  %1711 = vmatpush3.bf16.msra.mxu0 %v1814_v21 }
 0x161   :  { %v624_v38 = vpack.c.bf16 %v620_v33, %v620_v33  ;;  %v621_v39 = vmax.f32 %v617_v34, 0.0  ;;  %v665_v33 = vshrl.u32 %v634_v23, 16  ;;  %v1805_v34 = vld [vmem:[#allocation6 + $0x38] sm:$0xff]   ;;  %1712 = vmatprep.subr.bf16.mxu0 %v1902_v20  ;;  %v1817_v23 = vld [vmem:[%s2174_s5 + $0x18] sm:$0xff]  }
 0x162   :  { %v622_v40 = vpack.c.bf16 %v618_v36, %v618_v36  ;;  %v619_v41 = vmax.f32 %v615_v37, 0.0  ;;  %v955_v37 = vshll.u32 %v938_v28, 16  ;;  %v1299_v28 = vld [vmem:[%s2175_s6] sm:$0x3] }
 0x163   :  { %628 = vst [vmem:[#allocation2 + $0x1c] sm:$0xf] %v624_v38  ;;  %v625_v42 = vpack.c.bf16 %v621_v39, %v621_v39  ;;  %v1475_v44 = vrot.slane %v665_v33, 11 }
 0x164   :  { %626 = vst [vmem:[#allocation2 + $0x4] sm:$0xf] %v622_v40  ;;  %v623_v43 = vpack.c.bf16 %v619_v41, %v619_v41  ;;  %v1476_v40 = vrot.slane %v678_v27, 11  ;;  %v957_v47 = vrot.slane %v955_v37, 5  ;;  %v1821_v27 = vld [vmem:[%s2174_s5 + $0x38] sm:$0xff]  }
 0x165   :  { %629 = vst [vmem:[#allocation2 + $0x28] sm:$0xf] %v625_v42  ;;  %v971_v42 = vrot.slane %v969_v30, 5  ;;  %v1507_v30 = vld [vmem:[%s2173_s4] ss:$0 sm:$0xff] }
 0x166   :  { %627 = vst [vmem:[#allocation2 + $0x10] sm:$0xf] %v623_v43 }
 0x16a   :  { %v2057_v57 = vld [vmem:[#allocation2 + $0x1c] sm:$0xf] }
 0x16b   :  { %v631_v46 = vld [vmem:[#allocation2 + $0x4] sm:$0xf]  ;;  %v673_v38 = vshll.u32 %v2057_v57, 16 }
 0x16c   :  { %v644_v49 = vshrl.u32 %v631_v46, 16  ;;  %v2055_v50 = vld [vmem:[#allocation2 + $0x28] sm:$0xf]  ;;  %v647_v54 = vshll.u32 %v631_v46, 16  ;;  %v937_v9 = vld [vmem:[#allocation2 + $0x4] sm:$0xf] }
 0x16d   :  { %v633_v52 = vld [vmem:[#allocation2 + $0x10] sm:$0xf]  ;;  %v1478_v58 = vcombine.low %v2057_v57, %v2055_v50  ;;  %v946_v13 = vshrl.u32 %v937_v9, 16  ;;  %v949_v14 = vshll.u32 %v937_v9, 16  ;;  %v683_v15 = vshrl.u32 %v2055_v50, 16 }
 0x16e   :  { %v646_v53 = vrot.slane %v644_v49, 7  ;;  %v657_v55 = vshrl.u32 %v633_v52, 16  ;;  %v1477_v56 = vcombine.low %v631_v46, %v633_v52  ;;  %v660_v63 = vshll.u32 %v633_v52, 16  ;;  %v939_v7 = vld [vmem:[#allocation2 + $0x10] sm:$0xf] }
 0x16f   :  { %v960_v10 = vshrl.u32 %v939_v7, 16  ;;  %v963_v11 = vshll.u32 %v939_v7, 16  ;;  %v948_v24 = vrot.slane %v946_v13, 4  ;;  %v951_v25 = vrot.slane %v949_v14, 5  ;;  %v942_v7 = vld [vmem:[#allocation2 + $0x20] sm:$0x1] }
 0x170   :  { %v649_v61 = vor.u32 %v647_v54, %v646_v53  ;;  %v659_v62 = vrot.slane %v657_v55, 7  ;;  %1666 = vmatprep.mubr.bf16.mxu1 %v1477_v56  ;;  %v685_v26 = vrot.slane %v683_v15, 7  ;;  %v686_v32 = vshll.u32 %v2055_v50, 16  ;;  %v1807_v54 = vld [vmem:[#allocation6 + $0x88] sm:$0xff]   ;;  %v1808_v56 = vld [vmem:[#allocation6 + $0x90] sm:$0xff]  }
 0x171   :  { %1667 = vmatmul.mubr.bf16.vlgmr.msra.gmra.mrb[0].mxu1 %v1478_v58  ;;  %v962_v17 = vrot.slane %v960_v10, 4  ;;  %v965_v18 = vrot.slane %v963_v11, 5  ;;  %v952_v36 = vor.u32 %v951_v25, %v948_v24  ;;  %v943_v58 = vld [vmem:[#allocation2 + $0x28] sm:$0xf]  ;;  %v983_v11 = vshll.u32 %v942_v7, 16  ;;  %v1818_v24 = vld [vmem:[%s2174_s5 + $0x20] sm:$0xff]  }
 0x172   :  { %v662_v1 = vor.u32 %v660_v63, %v659_v62  ;;  %1671 = vmatpush3.bf16.msra.mxu1 %v1797_v19  ;;  %v650_v3 = vsel %vm2016_vm7, %v1473_v60, %v649_v61  ;;  %v670_v19 = vshrl.u32 %v2057_v57, 16  ;;  %v688_v39 = vor.u32 %v686_v32, %v685_v26  ;;  %v1809_v57 = vld [vmem:[#allocation6 + $0x98] sm:$0xff]   ;;  %v1820_v26 = vld [vmem:[%s2174_s5 + $0x30] sm:$0xff]   ;;  %v1508_v32 = vld [vmem:[%s2173_s4 + $0x1] ss:$0 sm:$0xff] }
 0x173   :  { %1672 = vmatprep.subr.bf16.mxu1 %v1799_v59  ;;  %v966_v29 = vor.u32 %v965_v18, %v962_v17  ;;  %v953_v46 = vrot.slane %v952_v36, 4  ;;  %v988_v60 = vshrl.u32 %v943_v58, 16  ;;  %v991_v61 = vshll.u32 %v943_v58, 16  ;;  %v1819_v25 = vld [vmem:[%s2174_s5 + $0x28] sm:$0xff]  }
 0x174   :  { %v663_v4 = vsel %vm2016_vm7, %v1474_v0, %v662_v1  ;;  %v672_v31 = vrot.slane %v670_v19, 7  ;;  %v689_v49 = vsel %vm2016_vm7, %v1476_v40, %v688_v39  ;;  %v1811_v0 = vld [vmem:[#allocation6 + $0xa8] sm:$0xff]   ;;  %v985_v16 = vrot.slane %v983_v11, 5 }
 0x175   :  { %v1487_v5 = vcombine.low %v650_v3, %v663_v4  ;;  %v967_v41 = vrot.slane %v966_v29, 4  ;;  %v958_v53 = vsel %vm2032_vm10, %v953_v46, %v957_v47  ;;  %v990_v1 = vrot.slane %v988_v60, 4  ;;  %v944_v3 = vld [vmem:[#allocation2 + $0x2c] sm:$0x1] }
 0x176   :  { %1673 = vmatpush3.bf16.msra.mxu1 %v1799_v59  ;;  %v675_v43 = vor.u32 %v673_v38, %v672_v31  ;;  %v941_v59 = vld [vmem:[#allocation2 + $0x1c] sm:$0xf]  ;;  %v997_v9 = vshll.u32 %v944_v3, 16  ;;  %v1306_v29 = vsel %vm1304_vm12, %v1299_v28, 0 }
 0x177   :  { %1686 = vmatprep.mubr.bf16.mxu1 %v1487_v5  ;;  %1674 = vmatprep.subr.bf16.mxu1 %v1800_v2  ;;  %v972_v50 = vsel %vm2032_vm10, %v967_v41, %v971_v42  ;;  %v974_v62 = vshrl.u32 %v941_v59, 16  ;;  %v977_v63 = vshll.u32 %v941_v59, 16 }
 0x178   :  { %v676_v51 = vsel %vm2016_vm7, %v1475_v44, %v675_v43  ;;  %v1497_v55 = vcombine.low %v958_v53, %v972_v50  ;;  %v999_v14 = vrot.slane %v997_v9, 5 }
 0x179   :  { %v1488_v52 = vcombine.low %v676_v51, %v689_v49  ;;  %v976_v4 = vrot.slane %v974_v62, 4  ;;  %v979_v5 = vrot.slane %v977_v63, 5 }
 0x17a   :  { %1675 = vmatpush3.bf16.msra.mxu1 %v1800_v2  ;;  %v993_v2 = vrot.slane %v991_v61, 5 }
 0x17b   :  { %1676 = vmatprep.subr.bf16.mxu1 %v1801_v6  ;;  %v980_v10 = vor.u32 %v979_v5, %v976_v4 }
 0x17d   :  { %v981_v15 = vrot.slane %v980_v10, 4 }
 0x17e   :  { %1677 = vmatpush3.bf16.msra.mxu1 %v1801_v6  ;;  %v1812_v6 = vld [vmem:[#allocation6 + $0xb0] sm:$0xff]  }
 0x17f   :  { %1678 = vmatprep.subr.bf16.mxu1 %v1802_v8  ;;  %v986_v18 = vsel %vm2032_vm10, %v981_v15, %v985_v16 }
 0x182   :  { %1679 = vmatpush3.bf16.msra.mxu1 %v1802_v8  ;;  %v994_v8 = vor.u32 %v993_v2, %v990_v1 }
 0x183   :  { %1680 = vmatprep.subr.bf16.mxu1 %v1803_v12 }
 0x184   :  { %v995_v13 = vrot.slane %v994_v8, 4 }
 0x186   :  { %1681 = vmatpush3.bf16.msra.mxu1 %v1803_v12  ;;  %v1813_v12 = vld [vmem:[#allocation6 + $0xb8] sm:$0xff]   ;;  %v1000_v17 = vsel %vm2032_vm10, %v995_v13, %v999_v14 }
 0x187   :  { %1682 = vmatprep.subr.bf16.mxu1 %v1804_v22  ;;  %v1498_v19 = vcombine.low %v986_v18, %v1000_v17 }
 0x18a   :  { %1683 = vmatpush3.bf16.msra.mxu1 %v1804_v22  ;;  %v1815_v22 = vld [vmem:[%s2174_s5 + $0x8] sm:$0xff]  }
 0x18b   :  { %1684 = vmatprep.subr.bf16.mxu1 %v1805_v34  ;;  %1713 = vmatpush3.bf16.msra.mxu0 %v1815_v22 }
 0x18c   :  { %1714 = vmatprep.subr.bf16.mxu0 %v1902_v20 }
 0x18e   :  { %1685 = vmatpush3.bf16.msra.mxu1 %v1805_v34 }
 0x18f   :  { %1690 = vmatprep.subr.bf16.mxu1 %v1806_v45  ;;  %1715 = vmatpush3.bf16.msra.mxu0 %v1816_v35 }
 0x190   :  { %1716 = vmatprep.subr.bf16.mxu0 %v1902_v20 }
 0x191   :  { %1687 = vmatmul.mubr.bf16.vlgmr.msra.gmra.mrb[0].mxu1 %v1488_v52 }
 0x192   :  { %1691 = vmatpush3.bf16.msra.mxu1 %v1806_v45  ;;  %1706 = vmatprep.mubr.bf16.mxu1 %v1497_v55 }
 0x193   :  { %1692 = vmatprep.subr.bf16.mxu1 %v1807_v54  ;;  %1717 = vmatpush3.bf16.msra.mxu0 %v1817_v23 }
 0x194   :  { %1718 = vmatprep.subr.bf16.mxu0 %v1902_v20 }
 0x196   :  { %1693 = vmatpush3.bf16.msra.mxu1 %v1807_v54 }
 0x197   :  { %1694 = vmatprep.subr.bf16.mxu1 %v1808_v56  ;;  %1719 = vmatpush3.bf16.msra.mxu0 %v1818_v24 }
 0x198   :  { %1720 = vmatprep.subr.bf16.mxu0 %v1902_v20 }
 0x19a   :  { %1695 = vmatpush3.bf16.msra.mxu1 %v1808_v56 }
 0x19b   :  { %1696 = vmatprep.subr.bf16.mxu1 %v1809_v57  ;;  %1721 = vmatpush3.bf16.msra.mxu0 %v1819_v25 }
 0x19c   :  { %1722 = vmatprep.subr.bf16.mxu0 %v1902_v20 }
 0x19e   :  { %1697 = vmatpush3.bf16.msra.mxu1 %v1809_v57 }
 0x19f   :  { %1698 = vmatprep.subr.bf16.mxu1 %v1810_v48  ;;  %1723 = vmatpush3.bf16.msra.mxu0 %v1820_v26 }
 0x1a0   :  { %1724 = vmatprep.subr.bf16.mxu0 %v1902_v20 }
 0x1a2   :  { %1699 = vmatpush3.bf16.msra.mxu1 %v1810_v48 }
 0x1a3   :  { %1700 = vmatprep.subr.bf16.mxu1 %v1811_v0  ;;  %1725 = vmatpush3.bf16.msra.mxu0 %v1821_v27 }
 0x1a6   :  { %1701 = vmatpush3.bf16.msra.mxu1 %v1811_v0 }
 0x1a7   :  { %1702 = vmatprep.subr.bf16.mxu1 %v1812_v6 }
 0x1aa   :  { %1703 = vmatpush3.bf16.msra.mxu1 %v1812_v6 }
 0x1ab   :  { %1704 = vmatprep.subr.bf16.mxu1 %v1813_v12 }
 0x1ae   :  { %1705 = vmatpush3.bf16.msra.mxu1 %v1813_v12 }
 0x1af   :  { %1730 = vmatprep.subr.bf16.mxu1 %v1902_v20 }
 0x1b1   :  { %1707 = vmatmul.mubr.bf16.vlgmr.msra.gmra.mrb[0].mxu1 %v1498_v19 }
 0x1b2   :  { %1732 = vmatprep.mubr.msk.bf16.mxu1 %vm1903_vm11, %v1902_v20  ;;  %1731 = vmatpush3.bf16.msra.mxu1 %v1306_v29 }
 0x284   :  { %v1708_v31 = vpop.f32.mrb[0].mxu1 }
 0x285   :  { %v1134_v33 = vmul.f32 %v1708_v31, %v1507_v30  ;;  %v1108_v34 = vpop.f32.mrb[1].mxu1 }
 0x286   :  { %v1132_v36 = vmul.f32 %v1507_v30, %v1108_v34  ;;  %v1709_v37 = vpop.f32.mrb[2].mxu1 }
 0x287   :  { %v2124_v38 = vadd.f32 %v1508_v32, %v1134_v33  ;;  %v1135_v39 = vmul.f32 %v1709_v37, %v1507_v30  ;;  %v1111_v20 = vpop.f32.mrb[3].mxu1  ;;  %v1904_v33 = vmov 1966171168  }
 0x288   :  { %v2126_v40 = vadd.f32 %v1508_v32, %v1132_v36  ;;  %v1133_v41 = vmul.f32 %v1507_v30, %v1111_v20  ;;  %v1356_v34 = vunpack.c.l.s4 %v1904_v33  ;;  %v1358_v36 = vlaneseq }
 0x289   :  { %v1157_v42 = vrot.slane %v2124_v38, 4  ;;  %v2129_v43 = vadd.f32 %v1508_v32, %v1135_v39 }
 0x28a   :  { %v1145_v44 = vrot.slane %v2126_v40, 4  ;;  %v2132_v45 = vadd.f32 %v1508_v32, %v1133_v41  ;;  %v1357_v37 = vunpack.c.0.s8 %v1356_v34  ;;  %v1359_v39 = vshrl.u32 %v1358_v36, 7 }
 0x28b   :  { %v1158_v46 = vadd.f32 %v1157_v42, %v2124_v38  ;;  %v1163_v47 = vrot.slane %v2129_v43, 4 }
 0x28c   :  { %v1146_v49 = vadd.f32 %v1145_v44, %v2126_v40  ;;  %v1151_v50 = vrot.slane %v2132_v45, 4  ;;  %v1360_v20 = vsub.s32 %v1357_v37, %v1359_v39  ;;  %v1381_v44 = vsub.s32 0, %v1359_v39 }
 0x28d   :  { %v1159_v51 = vrot.slane %v1158_v46, 2  ;;  %v1164_v52 = vadd.f32 %v1163_v47, %v2129_v43 }
 0x28e   :  { %v1147_v53 = vrot.slane %v1146_v49, 2  ;;  %v1152_v54 = vadd.f32 %v1151_v50, %v2132_v45 }
 0x28f   :  { %v1160_v55 = vadd.f32 %v1159_v51, %v1158_v46  ;;  %v1165_v56 = vrot.slane %v1164_v52, 2 }
 0x290   :  { %v1148_v57 = vadd.f32 %v1147_v53, %v1146_v49  ;;  %v1153_v58 = vrot.slane %v1152_v54, 2 }
 0x291   :  { %v1161_v48 = vrot.slane %v1160_v55, 1  ;;  %v1166_v59 = vadd.f32 %v1165_v56, %v1164_v52  ;;  %v1403_v52 = vld [vmem:[%s2169_s0] sm:$0xff] }
 0x292   :  { %v1149_v60 = vrot.slane %v1148_v57, 1  ;;  %v1154_v61 = vadd.f32 %v1153_v58, %v1152_v54  ;;  %v1405_v58 = vld [vmem:[%s2169_s0 + $0x10] sm:$0xff] }
 0x293   :  { %v1162_v62 = vadd.f32 %v1161_v48, %v1160_v55  ;;  %v1167_v63 = vrot.slane %v1166_v59, 1 }
 0x294   :  { %v1150_v0 = vadd.f32 %v1149_v60, %v1148_v57  ;;  %v1155_v1 = vrot.slane %v1154_v61, 1  ;;  %v1404_v57 = vld [vmem:[%s2169_s0 + $0x8] sm:$0xff] }
 0x295   :  { %v1171_v2 = vmul.f32 0.015625, %v1162_v62  ;;  %v1168_v3 = vadd.f32 %v1167_v63, %v1166_v59  ;;  %v1406_v62 = vld [vmem:[%s2169_s0 + $0x18] sm:$0xff] }
 0x296   :  { %v1169_v4 = vmul.f32 0.015625, %v1150_v0  ;;  %v1156_v5 = vadd.f32 %v1155_v1, %v1154_v61 }
 0x297   :  { %v1172_v6 = vmul.f32 0.015625, %v1168_v3  ;;  %v1175_v9 = vpack.c.bf16 %v1171_v2, %v1171_v2 }
 0x298   :  { %v1173_v7 = vpack.c.bf16 %v1169_v4, %v1169_v4  ;;  %v1170_v8 = vmul.f32 0.015625, %v1156_v5 }
 0x299   :  { %v1176_v10 = vpack.c.bf16 %v1172_v6, %v1172_v6  ;;  %v1199_v14 = vunpack.c.l.b16 %v1175_v9 }
 0x29a   :  { %v1174_v11 = vpack.c.bf16 %v1170_v8, %v1170_v8  ;;  %v1197_v12 = vunpack.c.l.b16 %v1173_v7 }
 0x29b   :  { %v1200_v15 = vunpack.c.l.b16 %v1176_v10 }
 0x29c   :  { %v1198_v13 = vunpack.c.l.b16 %v1174_v11 }
 0x29e   :  { %v1202_v16 = vsel %vm1201_vm13, %v1198_v13, %v1197_v12 }
 0x29f   :  { %v1204_v17 = vsel %vm1203_vm14, %v1199_v14, %v1202_v16 }
 0x2a0   :  { %v1206_v18 = vsel %vm56_vm1, %v1200_v15, %v1204_v17 }
 0x2a1   :  { %v1207_v19 = vpack.c.b16 %v1206_v18, %v1206_v18 }
 0x2a3   :  { %1727 = vmatmul.mubr.bf16.vlgmr.msra.gmra.mrb[4].mxu0 %v1207_v19 }
 0x376   :  { %v1291_v21 = vpop.f32.mrb[4].mxu0 }
 0x377   :  { %v1297_v22 = vmax.f32 %v1291_v21, 0.0  ;;  %v1728_v35 = vpop.f32.mrb[5].mxu0 }
 0x378   :  { %v1294_v23 = vpop.f32.mrb[6].mxu0 }
 0x379   :  { %v1298_v24 = vpack.c.bf16 %v1297_v22, %v1297_v22  ;;  %v1729_v25 = vpop.f32.mrb[7].mxu0 }
 0x37b   :  { %1733 = vmatmul.mubr.msk.bf16.vlgmr.msra.gmra.mrb[4].mxu1 %vm1300_vm15, %v1298_v24 }
 0x44e   :  { %v1342_v26 = vpop.f32.mrb[4].mxu1 }
 0x44f   :  { %v1518_v27 = vmul.f32 -1.442695, %v1342_v26  ;;  %v1734_v28 = vpop.f32.mrb[5].mxu1 }
 0x450   :  { %v1345_v29 = vpop.f32.mrb[6].mxu1 }
 0x451   :  { %1822 = vpow2.f32 %v1518_v27  ;;  %v1735_v30 = vpop.f32.mrb[7].mxu1 }
 0x45b   :  { %v1823_v31 = vpop.eup %1822 }
 0x45c   :  { %v1351_v32 = vadd.f32 1.0, %v1823_v31 }
 0x45e   :  { %1824 = vrcp.f32 %v1351_v32 }
 0x468   :  { %v1825_v41 = vpop.eup %1824 }
 0x469   :  { %v1361_v42 = vrot.slane %v1825_v41, %v1360_v20 }
 0x46b   :  { %v1362_v46 = vcombine.high %v1361_v42, %v1361_v42  ;;  %v1369_v47 = vrot.slane %v1361_v42, %v1360_v20 }
 0x46d   :  { %v1376_v49 = vrot.slane %v1362_v46, %v1360_v20  ;;  %v1377_v50 = vcombine.high %v1369_v47, %v1369_v47  ;;  %v1382_v51 = vrot.slane %v1369_v47, %v1381_v44 }
 0x46f   :  { %v1378_v53 = vcombine.high %v1376_v49, %v1376_v49  ;;  %v1386_v54 = vrot.slane %v1376_v49, %v1381_v44  ;;  %v1390_v55 = vrot.slane %v1377_v50, %v1381_v44  ;;  %v1399_v56 = vmul.f32 %v1382_v51, %v2126_v40 }
 0x471   :  { %v1394_v48 = vrot.slane %v1378_v53, %v1381_v44  ;;  %v1400_v59 = vmul.f32 %v1386_v54, %v2132_v45  ;;  %v1401_v60 = vmul.f32 %v1390_v55, %v2124_v38  ;;  %v1407_v61 = vadd.f32 %v1403_v52, %v1399_v56 }
 0x473   :  { %v1402_v40 = vmul.f32 %v1394_v48, %v2129_v43  ;;  %v1408_v63 = vadd.f32 %v1404_v57, %v1400_v59  ;;  %v1409_v0 = vadd.f32 %v1405_v58, %v1401_v60  ;;  %v1411_v1 = vmax.f32 %v1407_v61, 0.0 }
 0x475   :  { %v1410_v2 = vadd.f32 %v1406_v62, %v1402_v40  ;;  %v1412_v3 = vmax.f32 %v1408_v63, 0.0  ;;  %v1413_v4 = vmax.f32 %v1409_v0, 0.0  ;;  %1415 = vst [vmem:[#allocation8] sm:$0xff] %v1411_v1 }
 0x477   :  { %v1414_v5 = vmax.f32 %v1410_v2, 0.0  ;;  %1416 = vst [vmem:[#allocation8 + $0x8] sm:$0xff] %v1412_v3  ;;  %1417 = vst [vmem:[#allocation8 + $0x10] sm:$0xff] %v1413_v4 }
 0x479   :  { %1418 = vst [vmem:[#allocation8 + $0x18] sm:$0xff] %v1414_v5 }
 0x47a   :  { %1881 = shalt.err (!%p1878_p6)
}
 0x47b   :  { %s1882_s18 = scalar_lea.hbm %s2176_s7, 512 }
 0x47c   :  { %p1883_p7 = scmp.ne.s32.totalorder %s2176_s7, %s1882_s18  ;;  %p1886_p8 = scmp.lt.u32.totalorder %s1882_s18, %s2176_s7 }
 0x47e   :  { %p1888_p9 = pnand %p1886_p8, %p1883_p7 }
 0x480   :  { %1891 = shalt.err (!%p1888_p9)
}
 0x481   :  { %s1906_s23 = smov 128   ;;  %s1907_s24 = smov 8  }
 0x482   :  { %1430 = dma.vmem_to_hbm [thread:$0]  %s1425_s15, 512, %s2176_s7, [#allocation5], %s1906_s23, %s1906_s23, %s1907_s24  }
 0x483   :  { %1896 = dma.done.wait [#allocation5], 512  }
 0x484   :  { %1897 = vsyncadd [#allocation5], 4294966784 }
 0x485   :  { %1434 = vsyncpa [#allocation4], 1 }
 0x486   :  { %1435 = vsyncpa [#allocation7], 1 }
 0x487   :  { %1436 = vsyncpa [#allocation5], 1 }

</bundles_post_ra>
